<compile_context>
chip_gen: v7x
topology: tpu7x:2x2x1
jax: 0.10.0
libtpu: 0.0.40
codegen_flags: <defaults>
</compile_context>

<pallas_src>
import numpy as np
import jax
import jax.numpy as jnp
from jax.experimental import pallas as pl
from jax.experimental.pallas import tpu as pltpu


def _round_up(v, m):
    return (v + m - 1) // m * m


def _conv3x3_banded_kernel(x_ref, w_ref, b_ref, o_ref):
    # x_ref: (1, H+2, Lin_pad)  bf16 -- one zero-padded image, each row
    #                                   flattened to (W+2)*Cin contiguous lanes
    # w_ref: (3, Lin_pad, Lout_pad) bf16 -- banded weight slab per kernel row dy
    # b_ref: (1, Lout_pad)      f32  -- bias tiled per output pixel
    # o_ref: (1, H, Lout_pad)   f32  -- conv output rows (lane-dense)
    h = o_ref.shape[1]
    x = x_ref[0]                                             # (H+2, Lin_pad)
    acc = jnp.dot(x[0:h, :], w_ref[0],
                  preferred_element_type=jnp.float32)
    acc += jnp.dot(x[1:h + 1, :], w_ref[1],
                   preferred_element_type=jnp.float32)
    acc += jnp.dot(x[2:h + 2, :], w_ref[2],
                   preferred_element_type=jnp.float32)
    o_ref[0] = (acc + b_ref[...]).astype(o_ref.dtype)        # f32 epilogue


def conv3x3_rows(x_nchw, w_oihw, b):
    """3x3 'same' conv with bias. Returns (N, H, W*Cout) f32, NHWC row order."""
    n, cin, h, w = x_nchw.shape
    cout = w_oihw.shape[0]

    lin, lout = (w + 2) * cin, w * cout
    lin_pad, lout_pad = _round_up(lin, 128), _round_up(lout, 128)

    # Input prep (one XLA fusion): NCHW->NHWC, bf16, zero pad spatial, flatten
    # each padded row to contiguous lanes, zero-pad lanes to a multiple of 128.
    x_nhwc = jnp.transpose(x_nchw, (0, 2, 3, 1)).astype(jnp.bfloat16)
    x_pad = jnp.pad(x_nhwc, ((0, 0), (1, 1), (1, 1), (0, 0)))
    x_flat = x_pad.reshape(n, h + 2, lin)
    x_flat = jnp.pad(x_flat, ((0, 0), (0, 0), (0, lin_pad - lin)))

    # Banded weights: Bdy[p*Cin + ci, x*Cout + co] = w[co, ci, dy, p-x] when
    # 0 <= p-x < 3, zero otherwise.  One (Lin_pad, Lout_pad) slab per dy.
    w_k = jnp.transpose(w_oihw, (2, 3, 1, 0))                # (3, 3, Cin, Cout)
    p_idx = np.arange(w + 2)[:, None]
    x_idx = np.arange(w)[None, :]
    dx = p_idx - x_idx                                       # (W+2, W)
    valid = (dx >= 0) & (dx < 3)
    dx_c = np.clip(dx, 0, 2)
    slabs = []
    for dy in range(3):
        blk = w_k[dy][dx_c]                                  # (W+2, W, Cin, Cout)
        blk = jnp.where(valid[:, :, None, None], blk, 0.0)
        slabs.append(jnp.transpose(blk, (0, 2, 1, 3)).reshape(lin, lout))
    w_band = jnp.stack(slabs, axis=0)                        # (3, Lin, Lout)
    w_band = jnp.pad(
        w_band, ((0, 0), (0, lin_pad - lin), (0, lout_pad - lout))
    ).astype(jnp.bfloat16)

    # Bias tiled per output pixel, lane-padded with zeros, kept in f32.
    b_row = jnp.pad(jnp.tile(b.astype(jnp.float32), w), (0, lout_pad - lout))
    b_row = b_row.reshape(1, lout_pad)

    out = pl.pallas_call(
        _conv3x3_banded_kernel,
        out_shape=jax.ShapeDtypeStruct((n, h, lout_pad), jnp.float32),
        grid_spec=pltpu.PrefetchScalarGridSpec(
            num_scalar_prefetch=0,
            grid=(n,),
            in_specs=[
                pl.BlockSpec((1, h + 2, lin_pad), lambda i: (i, 0, 0)),
                pl.BlockSpec((3, lin_pad, lout_pad), lambda i: (0, 0, 0)),
                pl.BlockSpec((1, lout_pad), lambda i: (0, 0)),
            ],
            out_specs=pl.BlockSpec((1, h, lout_pad), lambda i: (i, 0, 0)),
        ),
        compiler_params=pltpu.CompilerParams(
            dimension_semantics=("parallel",)),
    )(x_flat, w_band, b_row)

    return out[:, :, :lout]                                  # drop zero lane pad


def first_layer_3(x_nchw, w, b):
    """forward(x) -> [x, PixelShuffle(3)(conv3x3(x))]"""
    n, _, h, w_ = x_nchw.shape
    cout = w.shape[0]
    r = 3
    co = cout // (r * r)

    conv_rows = conv3x3_rows(x_nchw, w, b)                   # (N, H, W*Cout) f32

    # Fused NHWC->NCHW + PixelShuffle(3): channel index = co*9 + ry*3 + rx.
    o = conv_rows.reshape(n, h, w_, co, r, r)
    o = jnp.transpose(o, (0, 3, 1, 4, 2, 5))                 # n, co, h, ry, w, rx
    up = o.reshape(n, co, h * r, w_ * r).astype(x_nchw.dtype)
    return [x_nchw, up]


def _pixel_shuffle_nchw(x, r):
    """PyTorch nn.PixelShuffle(r) on NCHW input (reference only)."""
    n, c, h, w = x.shape
    co = c // (r * r)
    y = x.reshape(n, co, r, r, h, w)
    y = jnp.transpose(y, (0, 1, 4, 2, 5, 3))
    return y.reshape(n, co, h * r, w * r)


if __name__ == "__main__":
    # n_feats must be divisible by 9 for PixelShuffle(3); keep shapes small.
    N, n_feats, H, W = 2, 36, 8, 8

    key = jax.random.PRNGKey(0)
    kx, kw, kb = jax.random.split(key, 3)
    x = jax.random.normal(kx, (N, n_feats, H, W), dtype=jnp.float32)
    # Conv2d(n_feats, n_feats, 3, bias=True): weight OIHW, bias (Cout,)
    w = jax.random.normal(kw, (n_feats, n_feats, 3, 3), dtype=jnp.float32) * 0.05
    b = jax.random.normal(kb, (n_feats,), dtype=jnp.float32) * 0.05

    out = first_layer_3(x, w, b)
    out = [jax.block_until_ready(o) for o in out]

    # Shapes match PyTorch semantics.
    assert out[0].shape == (N, n_feats, H, W)
    assert out[1].shape == (N, n_feats // 9, H * 3, W * 3)
    assert jnp.array_equal(out[0], x)

    # Like-for-like reference: bf16 operands, f32 accumulation (matches kernel).
    ref_conv = jax.lax.conv_general_dilated(
        x.astype(jnp.bfloat16), w.astype(jnp.bfloat16),
        window_strides=(1, 1), padding=((1, 1), (1, 1)),
        dimension_numbers=("NCHW", "OIHW", "NCHW"),
        preferred_element_type=jnp.float32) + b[None, :, None, None]
    ref_up = _pixel_shuffle_nchw(ref_conv, 3)
    assert jnp.allclose(out[1], ref_up, atol=2e-2, rtol=2e-2)

    print("KERNEL_OK")
</pallas_src>

<mosaic_0001>
module attributes {stable_mosaic.version = 11 : i64} {
  func.func @_conv3x3_banded_kernel(%arg0: i32, %arg1: memref<1x10x384xbf16, #tpu.memory_space<vmem>>, %arg2: memref<3x384x384xbf16, #tpu.memory_space<vmem>>, %arg3: memref<1x384xf32, #tpu.memory_space<vmem>>, %arg4: memref<1x8x384xf32, #tpu.memory_space<vmem>>) attributes {dimension_semantics = [#tpu.dimension_semantics<parallel>], iteration_bounds = array<i64: 2>, scalar_prefetch = 0 : i64, scratch_operands = 0 : i64, tpu.core_type = #tpu.core_type<tc>, window_params = [{transform_indices = @transform_0, window_bounds = array<i64: 1, 10, 384>}, {pipeline_mode = #tpu.pipeline_mode<synchronous>, transform_indices = @transform_1, window_bounds = array<i64: 3, 384, 384>}, {pipeline_mode = #tpu.pipeline_mode<synchronous>, transform_indices = @transform_2, window_bounds = array<i64: 1, 384>}, {transform_indices = @transform_3, window_bounds = array<i64: 1, 8, 384>}]} {
    %c0 = arith.constant 0 : index
    %c0_0 = arith.constant 0 : index
    %c0_1 = arith.constant 0 : index
    %0 = vector.load %arg1[%c0, %c0_0, %c0_1] : memref<1x10x384xbf16, #tpu.memory_space<vmem>>, vector<1x10x384xbf16>
    %1 = vector.shape_cast %0 : vector<1x10x384xbf16> to vector<10x384xbf16>
    %2 = vector.extract_strided_slice %1 {offsets = [0, 0], sizes = [8, 384], strides = [1, 1]} : vector<10x384xbf16> to vector<8x384xbf16>
    %c0_2 = arith.constant 0 : index
    %c0_3 = arith.constant 0 : index
    %c0_4 = arith.constant 0 : index
    %3 = vector.load %arg2[%c0_2, %c0_3, %c0_4] : memref<3x384x384xbf16, #tpu.memory_space<vmem>>, vector<1x384x384xbf16>
    %4 = vector.shape_cast %3 : vector<1x384x384xbf16> to vector<384x384xbf16>
    %cst = arith.constant dense<0.000000e+00> : vector<8x384xf32>
    %5 = tpu.matmul %2, %4, %cst {dimension_numbers = #tpu.dot_dimension_numbers<[1], [0], [0], [1], [0, 0, 1, 1], [], []>} : vector<8x384xbf16>, vector<384x384xbf16>, vector<8x384xf32> -> vector<8x384xf32>
    %6 = vector.extract_strided_slice %1 {offsets = [1, 0], sizes = [8, 384], strides = [1, 1]} : vector<10x384xbf16> to vector<8x384xbf16>
    %c1 = arith.constant 1 : index
    %c0_5 = arith.constant 0 : index
    %c0_6 = arith.constant 0 : index
    %7 = vector.load %arg2[%c1, %c0_5, %c0_6] : memref<3x384x384xbf16, #tpu.memory_space<vmem>>, vector<1x384x384xbf16>
    %8 = vector.shape_cast %7 : vector<1x384x384xbf16> to vector<384x384xbf16>
    %cst_7 = arith.constant dense<0.000000e+00> : vector<8x384xf32>
    %9 = tpu.matmul %6, %8, %cst_7 {dimension_numbers = #tpu.dot_dimension_numbers<[1], [0], [0], [1], [0, 0, 1, 1], [], []>} : vector<8x384xbf16>, vector<384x384xbf16>, vector<8x384xf32> -> vector<8x384xf32>
    %10 = arith.addf %5, %9 : vector<8x384xf32>
    %11 = vector.extract_strided_slice %1 {offsets = [2, 0], sizes = [8, 384], strides = [1, 1]} : vector<10x384xbf16> to vector<8x384xbf16>
    %c2 = arith.constant 2 : index
    %c0_8 = arith.constant 0 : index
    %c0_9 = arith.constant 0 : index
    %12 = vector.load %arg2[%c2, %c0_8, %c0_9] : memref<3x384x384xbf16, #tpu.memory_space<vmem>>, vector<1x384x384xbf16>
    %13 = vector.shape_cast %12 : vector<1x384x384xbf16> to vector<384x384xbf16>
    %cst_10 = arith.constant dense<0.000000e+00> : vector<8x384xf32>
    %14 = tpu.matmul %11, %13, %cst_10 {dimension_numbers = #tpu.dot_dimension_numbers<[1], [0], [0], [1], [0, 0, 1, 1], [], []>} : vector<8x384xbf16>, vector<384x384xbf16>, vector<8x384xf32> -> vector<8x384xf32>
    %15 = arith.addf %10, %14 : vector<8x384xf32>
    %c0_11 = arith.constant 0 : index
    %c0_12 = arith.constant 0 : index
    %16 = vector.load %arg3[%c0_11, %c0_12] : memref<1x384xf32, #tpu.memory_space<vmem>>, vector<1x384xf32>
    %17 = vector.broadcast %16 : vector<1x384xf32> to vector<8x384xf32>
    %18 = arith.addf %15, %17 : vector<8x384xf32>
    %c0_13 = arith.constant 0 : index
    %c0_14 = arith.constant 0 : index
    %c0_15 = arith.constant 0 : index
    %19 = vector.load %arg4[%c0_13, %c0_14, %c0_15] : memref<1x8x384xf32, #tpu.memory_space<vmem>>, vector<1x8x384xf32>
    %20 = vector.shape_cast %19 : vector<1x8x384xf32> to vector<8x384xf32>
    %21 = vector.shape_cast %18 : vector<8x384xf32> to vector<1x8x384xf32>
    tpu.vector_store %arg4[%c0_13, %c0_14, %c0_15], %21 {strides = array<i32>} : memref<1x8x384xf32, #tpu.memory_space<vmem>>, vector<1x8x384xf32>,
    return
  }
  func.func @transform_0(%arg0: i32) -> (i32, i32, i32) {
    %c0_i32 = arith.constant 0 : i32
    %c0_i32_0 = arith.constant 0 : i32
    %c0_i32_1 = arith.constant 0 : i32
    return %arg0, %c0_i32, %c0_i32_0 : i32, i32, i32
  }
  func.func @transform_1(%arg0: i32) -> (i32, i32, i32) {
    %c0_i32 = arith.constant 0 : i32
    %c0_i32_0 = arith.constant 0 : i32
    %c0_i32_1 = arith.constant 0 : i32
    %c0_i32_2 = arith.constant 0 : i32
    return %c0_i32, %c0_i32_0, %c0_i32_1 : i32, i32, i32
  }
  func.func @transform_2(%arg0: i32) -> (i32, i32) {
    %c0_i32 = arith.constant 0 : i32
    %c0_i32_0 = arith.constant 0 : i32
    %c0_i32_1 = arith.constant 0 : i32
    return %c0_i32, %c0_i32_0 : i32, i32
  }
  func.func @transform_3(%arg0: i32) -> (i32, i32, i32) {
    %c0_i32 = arith.constant 0 : i32
    %c0_i32_0 = arith.constant 0 : i32
    %c0_i32_1 = arith.constant 0 : i32
    return %arg0, %c0_i32, %c0_i32_0 : i32, i32, i32
  }
}

</mosaic_0001>

<bundles_post_ra>
// kernel: tpu_custom_call.1
= control target key start
LH: loop header
LB: loop body
LE: loop exit
PB: predicated region body
PF: predicated region fallthrough
CT: control target
= control target key end

     0   :  { %8 = vsyncpa [#allocation3], 0  ;;  %s3371_s0 = inlined_call_operand.vmem [shape: bf16[2,10,384], index: 0, kind: input, shape index: {}]   ;;  %s3372_s1 = inlined_call_operand.hbm [shape: bf16[3,384,384], index: 1, kind: input, shape index: {}]   ;;  %s3373_s2 = inlined_call_operand.vmem [shape: f32[1,384], index: 2, kind: input, shape index: {}]   ;;  %s3374_s3 = inlined_call_operand.hbm [shape: f32[2,8,384], index: 3, kind: output, shape index: {}]  }
   0x1   :  { %9 = vsyncpa [#allocation4], 0 }
   0x2   :  { %11 = vsyncpa [#allocation4 + $0x1], 0  ;;  %s3138_s12 = smov 0   ;;  %s3140_s13 = smov 0  }
   0x3   :  { %s3142_s14 = smov 0   ;;  %s3144_s15 = smov 0  }
   0x4 LB: > { %s3159_s16 = sadd.s32 4294967295, %s3109_s15   ;;  %s2278_s17 = sadd.s32 4294967294, %s3109_s15   ;;  %s3109_s15 = sphi %s3144_s15, %s3390_s15   ;;  %s3105_s14 = sphi %s3142_s14, %s3389_s14   ;;  %s3101_s13 = sphi %s3140_s13, %s3388_s13   ;;  %s3097_s12 = sphi %s3138_s12, %s3387_s12  }
   0x5   : > { %s3163_s18 = sadd.s32 1, %s3109_s15   ;;  %s92_s19 = sadd.s32 1, %s3105_s14 }
   0x6   : > { %s89_s20 = ssub.s32 %s3109_s15, %s3163_s18  ;;  %p102_p0 = scmp.ne.s32.totalorder %s3105_s14, %s3101_s13 }
   0x7   : > { %p90_p1 = scmp.eq.s32.totalorder %s89_s20, 0  ;;  %p103_p2 = scmp.eq.s32.totalorder %s3159_s16, 1 }
   0x8   : > { %p108_p3 = scmp.ne.s32.totalorder %s3101_s13, %s3097_s12  ;;  %p109_p4 = scmp.eq.s32.totalorder %s2278_s17, 1 }
   0x9   : > { %s3174_s21 = scalar_select %p90_p1, %s3105_s14, %s92_s19  }
   0xa   : > { %p3176_p5 = por %p103_p2, %p102_p0  ;;  %p3180_p6 = por %p109_p4, %p108_p3 }
   0xb   : > { %p2279_p7 = scmp.ge.s32.totalorder %s3109_s15, 1  ;;  %p116_p8 = scmp.lt.s32.totalorder %s3109_s15, 3 }
   0xc   : > { %s3378_s22 = scalar_select %p3176_p5, 1, 0 }
   0xd   : > { %s3379_s23 = scalar_select %p3180_p6, 1, 0 }
   0xe   : > { %p3375_p9 = scmp.eq.s32.totalorder %s3159_s16, 0  ;;  %p3187_p10 = pnand %p2279_p7, %p116_p8 }
   0xf   : > { %s3111_s25 = smov [#allocation2]   ;;  %s3015_s30 = scalar_lea.hbm %s3372_s1, 27648 }
  0x10   : > { %s3380_s24 = scalar_select %p3187_p10, 1, 0 }
  0x11   : > { %s128_s26 = sshll.u32 %s3111_s25, 4  ;;  %p2672_p11 = pneg %p3187_p10  ;;  %s129_s26 = int_to_ptr.vmem [resolvable:$true] %s128_s26 }
  0x12   : > { %p3016_p13 = scmp.ne.s32.totalorder %s3372_s1, %s3015_s30  ;;  %p3022_p3 = scmp.lt.u32.totalorder %s3015_s30, %s3372_s1 }
  0x13   : > { %p3195_p12 = pnand %p3375_p9, %p2672_p11 }
  0x15   : > { %p3017_p0 = pneg %p3195_p12 }
  0x17   : > { %p3018_p1 = pnand %p3017_p0, %p3016_p13 }
  0x19   : > { %p3019_p2 = pneg %p3018_p1 }
  0x1b   : > { %p3024_p4 = pnand %p3022_p3, %p3019_p2 }
  0x1d   : > { %3027 = shalt.err (!%p3024_p4)
}
  0x1e   : > { %s3028_s8 = scalar_lea.vmem %s129_s26, 27648  ;;  %p3036_p9 = scmp.lt.s32.totalorder %s129_s26, %s129_s26 }
  0x1f   : > { %p3029_p7 = scmp.ne.s32.totalorder %s129_s26, %s3028_s8  ;;  %p3037_p6 = scmp.lt.s32.totalorder %s3028_s8, %s3028_s8 }
  0x21   : > { %p3031_p8 = pnand %p3029_p7, %p3017_p0  ;;  %p3038_p5 = por %p3037_p6, %p3036_p9 }
  0x23   : > { %p3032_p11 = pneg %p3031_p8 }
  0x25   : > { %p3039_p10 = pnand %p3038_p5, %p3032_p11 }
  0x27   : > { %3042 = shalt.err (!%p3039_p10)
}
  0x28   : > { %s3112_s9 = smov 192   ;;  %s3113_s10 = smov 12  }
  0x29   : > { %2675 = dma.hbm_to_vmem [thread:$0]  (!%p3195_p12), %s3372_s1, 27648, %s129_s26, [#allocation3], %s3112_s9, %s3112_s9, %s3113_s10  }
  0x2a   : > { %p3382_p13 = scmp.ne.s32.totalorder %s3380_s24, 0 }
  0x2b   : > { %p3383_p1 = scmp.eq.s32.totalorder (!%p3382_p13), %s3159_s16, 0 }
  0x2c   : > { %155 = sbr.rel (%p3382_p13) target bundleno = 541 (0x21d), region = 32 }
  0x33   : > { %3088 = dma.done.wait (%p3383_p1), [#allocation3], 27648   ;;  %p3384_p0 = pmov %p3383_p1 }
  0x34   : > { %v3114_v0 = vmov 0   ;;  %v2721_v1 = vld [vmem:[#allocation2 + $0x244] ss:$12 sps:$4 sm:$0xff]   ;;  %v2725_v3 = vld [vmem:[#allocation2 + $0x240] ss:$12 sps:$4 sm:$0xff]   ;;  %p179_p5 = scmp.lt.s32.totalorder %s3159_s16, 1 }
  0x35   : > { %3090 = vsyncadd (%p3384_p0), [#allocation3], 4294939648  ;;  %876 = vmatprep.mubr.bf16.mxu1 %v3114_v0  ;;  %v2723_v2 = vld [vmem:[#allocation2 + $0x3c4] ss:$12 sps:$4 sm:$0xff]   ;;  %803 = vmatprep.subr.bf16.mxu0 %v2721_v1  ;;  %v2726_v4 = vld [vmem:[#allocation2 + $0x3c0] ss:$12 sps:$4 sm:$0xff]  }
  0x36   : > { %844 = vmatprep.subr.bf16.mxu1 %v2723_v2  ;;  %v2727_v5 = vld [vmem:[#allocation2 + $0x25c] ss:$12 sps:$4 sm:$0xff]   ;;  %804 = vmatpush1.bf16.msra.mxu0 %v2725_v3  ;;  %v2731_v7 = vld [vmem:[#allocation2 + $0x258] ss:$12 sps:$4 sm:$0xff]   ;;  %v2733_v9 = vld [vmem:[#allocation2 + $0x274] ss:$12 sps:$4 sm:$0xff]  }
  0x37   : > { %845 = vmatpush1.bf16.msra.mxu1 %v2726_v4  ;;  %v2729_v6 = vld [vmem:[#allocation2 + $0x3dc] ss:$12 sps:$4 sm:$0xff]   ;;  %805 = vmatprep.subr.bf16.mxu0 %v2727_v5  ;;  %v2732_v8 = vld [vmem:[#allocation2 + $0x3d8] ss:$12 sps:$4 sm:$0xff]   ;;  %v2735_v10 = vld [vmem:[#allocation2 + $0x3f4] ss:$12 sps:$4 sm:$0xff]  }
  0x38   : > { %846 = vmatprep.subr.bf16.mxu1 %v2729_v6  ;;  %v2737_v11 = vld [vmem:[#allocation2 + $0x270] ss:$12 sps:$4 sm:$0xff]   ;;  %v2739_v13 = vld [vmem:[#allocation2 + $0x28c] ss:$12 sps:$4 sm:$0xff]   ;;  %v2743_v15 = vld [vmem:[#allocation2 + $0x288] ss:$12 sps:$4 sm:$0xff]  }
  0x39   : > { %v2738_v12 = vld [vmem:[#allocation2 + $0x3f0] ss:$12 sps:$4 sm:$0xff]   ;;  %v2741_v14 = vld [vmem:[#allocation2 + $0x40c] ss:$12 sps:$4 sm:$0xff]   ;;  %v2744_v16 = vld [vmem:[#allocation2 + $0x408] ss:$12 sps:$4 sm:$0xff]  }
  0x3a   : > { %806 = vmatpush1.bf16.msra.mxu0 %v2731_v7  ;;  %v2745_v17 = vld [vmem:[#allocation2 + $0x2a4] ss:$12 sps:$4 sm:$0xff]   ;;  %s180_s19 = scalar_select %p179_p5, %s3159_s16, 1  ;;  %v2749_v19 = vld [vmem:[#allocation2 + $0x2a0] ss:$12 sps:$4 sm:$0xff]   ;;  %vm3116_vm0 = vmmov 0  }
  0x3b   : > { %847 = vmatpush1.bf16.msra.mxu1 %v2732_v8  ;;  %807 = vmatprep.subr.bf16.mxu0 %v2733_v9  ;;  %v2747_v18 = vld [vmem:[#allocation2 + $0x424] ss:$12 sps:$4 sm:$0xff]   ;;  %v2750_v20 = vld [vmem:[#allocation2 + $0x420] ss:$12 sps:$4 sm:$0xff]   ;;  %v2751_v21 = vld [vmem:[#allocation2 + $0x2bc] ss:$12 sps:$4 sm:$0xff]  }
  0x3c   : > { %848 = vmatprep.subr.bf16.mxu1 %v2735_v10  ;;  %s2664_s20 = smul.u32 24, %s180_s19  ;;  %v2753_v22 = vld [vmem:[#allocation2 + $0x43c] ss:$12 sps:$4 sm:$0xff]   ;;  %v2755_v23 = vld [vmem:[#allocation2 + $0x2b8] ss:$12 sps:$4 sm:$0xff]   ;;  %s176_s27 = sand.u32 1, %s3101_s13  }
  0x3d   : > { %v2756_v24 = vld [vmem:[#allocation2 + $0x438] ss:$12 sps:$4 sm:$0xff]   ;;  %v2757_v25 = vld [vmem:[#allocation2 + $0x2d4] ss:$12 sps:$4 sm:$0xff]   ;;  %v2761_v27 = vld [vmem:[#allocation2 + $0x2d0] ss:$12 sps:$4 sm:$0xff]  }
  0x3e   : > { %808 = vmatpush1.bf16.msra.mxu0 %v2737_v11  ;;  %s3227_s26 = scalar_lea.vmem %s3371_s0, %s2664_s20  ;;  %v2759_v26 = vld [vmem:[#allocation2 + $0x454] ss:$12 sps:$4 sm:$0xff]   ;;  %v2762_v28 = vld [vmem:[#allocation2 + $0x450] ss:$12 sps:$4 sm:$0xff]   ;;  %v2763_v29 = vld [vmem:[#allocation2 + $0x2ec] ss:$12 sps:$4 sm:$0xff]  }
  0x3f   : > { %849 = vmatpush1.bf16.msra.mxu1 %v2738_v12  ;;  %809 = vmatprep.subr.bf16.mxu0 %v2739_v13  ;;  %v3230_v30 = vld [vmem:[%s3227_s26 + $0x8] sm:$0xf]  ;;  %v188_v31 = vld [vmem:[%s3227_s26 + $0x14] sm:$0x1]  ;;  %v2767_v34 = vld [vmem:[#allocation2 + $0x2e8] ss:$12 sps:$4 sm:$0xff]  }
  0x40   : > { %850 = vmatprep.subr.bf16.mxu1 %v2741_v14  ;;  %v2765_v32 = vld [vmem:[#allocation2 + $0x46c] ss:$12 sps:$4 sm:$0xff]   ;;  %v3234_v33 = vcombine.low %v3230_v30, %v188_v31  ;;  %v2768_v35 = vld [vmem:[#allocation2 + $0x468] ss:$12 sps:$4 sm:$0xff]   ;;  %v2769_v38 = vld [vmem:[#allocation2 + $0x304] ss:$12 sps:$4 sm:$0xff]  }
  0x41   : > { %v2771_v39 = vld [vmem:[#allocation2 + $0x308] ss:$12 sps:$4 sm:$0xff]   ;;  %v2772_v41 = vld [vmem:[#allocation2 + $0x300] ss:$12 sps:$4 sm:$0xff]   ;;  %v2778_v46 = vld [vmem:[#allocation2 + $0x318] ss:$12 sps:$4 sm:$0xff]  }
  0x42   : > { %810 = vmatpush1.bf16.msra.mxu0 %v2743_v15  ;;  %v410_v36 = vshrl.u32 %v3234_v33, 16  ;;  %v412_v37 = vshll.u32 %v3234_v33, 16  ;;  %v2774_v43 = vld [vmem:[#allocation2 + $0x248] ss:$12 sps:$4 sm:$0xff]   ;;  %v2777_v45 = vld [vmem:[#allocation2 + $0x320] ss:$12 sps:$4 sm:$0xff]  }
  0x43   : > { %851 = vmatpush1.bf16.msra.mxu1 %v2744_v16  ;;  %811 = vmatprep.subr.bf16.mxu0 %v2745_v17  ;;  %v2775_v44 = vld [vmem:[#allocation2 + $0x31c] ss:$12 sps:$4 sm:$0xff]   ;;  %v2779_v47 = vld [vmem:[#allocation2 + $0x260] ss:$12 sps:$4 sm:$0xff]   ;;  %v2782_v49 = vld [vmem:[#allocation2 + $0x338] ss:$12 sps:$4 sm:$0xff]  }
  0x44   : > { %852 = vmatprep.subr.bf16.mxu1 %v2747_v18  ;;  %v414_v40 = vrot.slane %v412_v37, 1  ;;  %v2780_v48 = vld [vmem:[#allocation2 + $0x334] ss:$12 sps:$4 sm:$0xff]   ;;  %v2783_v50 = vld [vmem:[#allocation2 + $0x330] ss:$12 sps:$4 sm:$0xff]   ;;  %s2663_s30 = smul.u32 24, %s176_s27 }
  0x45   : > { %v2784_v51 = vld [vmem:[#allocation2 + $0x278] ss:$12 sps:$4 sm:$0xff]   ;;  %v2787_v53 = vld [vmem:[#allocation2 + $0x350] ss:$12 sps:$4 sm:$0xff]   ;;  %v2788_v54 = vld [vmem:[#allocation2 + $0x348] ss:$12 sps:$4 sm:$0xff]  }
  0x46   : > { %812 = vmatpush1.bf16.msra.mxu0 %v2749_v19  ;;  %v3238_v42 = vor.u32 %v414_v40, %v410_v36  ;;  %v2785_v52 = vld [vmem:[#allocation2 + $0x34c] ss:$12 sps:$4 sm:$0xff]   ;;  %v2789_v55 = vld [vmem:[#allocation2 + $0x290] ss:$12 sps:$4 sm:$0xff]   ;;  %v2792_v57 = vld [vmem:[#allocation2 + $0x368] ss:$12 sps:$4 sm:$0xff]  }
  0x47   : > { %853 = vmatpush1.bf16.msra.mxu1 %v2750_v20  ;;  %813 = vmatprep.subr.bf16.mxu0 %v2751_v21  ;;  %v2790_v56 = vld [vmem:[#allocation2 + $0x364] ss:$12 sps:$4 sm:$0xff]   ;;  %v2793_v58 = vld [vmem:[#allocation2 + $0x360] ss:$12 sps:$4 sm:$0xff]   ;;  %v2794_v59 = vld [vmem:[#allocation2 + $0x2a8] ss:$12 sps:$4 sm:$0xff]  }
  0x48   : > { %854 = vmatprep.subr.bf16.mxu1 %v2753_v22  ;;  %v2795_v60 = vld [vmem:[#allocation2 + $0x37c] ss:$12 sps:$4 sm:$0xff]   ;;  %v2797_v61 = vld [vmem:[#allocation2 + $0x380] ss:$12 sps:$4 sm:$0xff]   ;;  %v3242_v62 = vld [vmem:[%s3227_s26] sm:$0xff]  ;;  %s178_s4 = scalar_lea.vmem [#allocation5], %s2663_s30 }
  0x49   : > { %v187_v63 = vld [vmem:[%s3227_s26 + $0xc] sm:$0x11]  ;;  %v2798_v2 = vld [vmem:[#allocation2 + $0x378] ss:$12 sps:$4 sm:$0xff]   ;;  %v2808_v18 = vld [vmem:[#allocation2 + $0x3a8] ss:$12 sps:$4 sm:$0xff]  }
  0x4a   : > { %814 = vmatpush1.bf16.msra.mxu0 %v2755_v23  ;;  %v3246_v1 = vcombine.high %v3242_v62, %v187_v63  ;;  %v3249_v3 = vcombine.low %v3242_v62, %v187_v63  ;;  %v2799_v4 = vld [vmem:[#allocation2 + $0x2c0] ss:$12 sps:$4 sm:$0xff]   ;;  %v2802_v8 = vld [vmem:[#allocation2 + $0x398] ss:$12 sps:$4 sm:$0xff]   ;;  %v2803_v9 = vld [vmem:[#allocation2 + $0x390] ss:$12 sps:$4 sm:$0xff]  }
  0x4b   : > { %855 = vmatpush1.bf16.msra.mxu1 %v2756_v24  ;;  %815 = vmatprep.subr.bf16.mxu0 %v2757_v25  ;;  %v2800_v7 = vld [vmem:[#allocation2 + $0x394] ss:$12 sps:$4 sm:$0xff]   ;;  %v2804_v11 = vld [vmem:[#allocation2 + $0x2d8] ss:$12 sps:$4 sm:$0xff]   ;;  %v2807_v15 = vld [vmem:[#allocation2 + $0x3b0] ss:$12 sps:$4 sm:$0xff]  }
  0x4c   : > { %856 = vmatprep.subr.bf16.mxu1 %v2759_v26  ;;  %v403_v5 = vshrl.u32 %v3246_v1, 16  ;;  %v405_v6 = vshll.u32 %v3246_v1, 16  ;;  %v398_v12 = vshll.u32 %v3249_v3, 16  ;;  %v2805_v13 = vld [vmem:[#allocation2 + $0x3ac] ss:$12 sps:$4 sm:$0xff]   ;;  %v396_v16 = vshrl.u32 %v3249_v3, 16 }
  0x4d   : > { %v2809_v19 = vld [vmem:[#allocation2 + $0x2f0] ss:$12 sps:$4 sm:$0xff]   ;;  %v2812_v22 = vld [vmem:[#allocation2] ss:$12 sps:$4 sm:$0xff]   ;;  %v2815_v23 = vld [vmem:[#allocation2 + $0x3c8] ss:$12 sps:$4 sm:$0xff]   ;;  %v3258_v26 = vcombine.high %v3242_v62, %v3242_v62 }
  0x4e   : > { %816 = vmatpush1.bf16.msra.mxu0 %v2761_v27  ;;  %v407_v10 = vrot.slane %v405_v6, 1  ;;  %v400_v17 = vrot.slane %v398_v12, 1  ;;  %v2814_v20 = vld [vmem:[#allocation2 + $0x4] ss:$12 sps:$4 sm:$0xff]   ;;  %v3115_v24 = vmov 0.0   ;;  %s2665_s5 = smul.u32 384, %s3159_s16 }
  0x4f   : > { %857 = vmatpush1.bf16.msra.mxu1 %v2762_v28  ;;  %817 = vmatprep.subr.bf16.mxu0 %v2763_v29  ;;  %v2818_v25 = vld [vmem:[#allocation2 + $0x1c] ss:$12 sps:$4 sm:$0xff]   ;;  %v2816_v27 = vld [vmem:[#allocation2 + $0x18] ss:$12 sps:$4 sm:$0xff]   ;;  %v2819_v28 = vld [vmem:[#allocation2 + $0x3e0] ss:$12 sps:$4 sm:$0xff]  }
  0x50   : > { %858 = vmatprep.subr.bf16.mxu1 %v2765_v32  ;;  %v408_v14 = vor.u32 %v407_v10, %v403_v5  ;;  %v401_v21 = vor.u32 %v400_v17, %v396_v16  ;;  %v2822_v29 = vld [vmem:[#allocation2 + $0x34] ss:$12 sps:$4 sm:$0xff]   ;;  %v2820_v31 = vld [vmem:[#allocation2 + $0x30] ss:$12 sps:$4 sm:$0xff]   ;;  %v2823_v32 = vld [vmem:[#allocation2 + $0x3f8] ss:$12 sps:$4 sm:$0xff]   ;;  %s3327_s9 = scalar_lea.hbm %s3374_s3, %s2665_s5 }
  0x51   : > { %v2827_v36 = vld [vmem:[#allocation2 + $0x410] ss:$12 sps:$4 sm:$0xff]   ;;  %v2864_v63 = vld [vmem:[#allocation2 + $0x10c] ss:$12 sps:$4 sm:$0xff]   ;;  %v2865_v5 = vld [vmem:[#allocation2 + $0x1c8] ss:$12 sps:$4 sm:$0xff]  }
  0x52   : > { %818 = vmatpush1.bf16.msra.mxu0 %v2767_v34  ;;  %835 = vmatprep.mubr.bf16.mxu0 %v408_v14  ;;  %v2826_v34 = vld [vmem:[#allocation2 + $0x4c] ss:$12 sps:$4 sm:$0xff]   ;;  %v2830_v37 = vld [vmem:[#allocation2 + $0x64] ss:$12 sps:$4 sm:$0xff]   ;;  %v2834_v40 = vld [vmem:[#allocation2 + $0x7c] ss:$12 sps:$4 sm:$0xff]  }
  0x53   : > { %859 = vmatpush1.bf16.msra.mxu1 %v2768_v35  ;;  %819 = vmatprep.subr.bf16.mxu0 %v2769_v38  ;;  %v2824_v35 = vld [vmem:[#allocation2 + $0x48] ss:$12 sps:$4 sm:$0xff]   ;;  %v2828_v38 = vld [vmem:[#allocation2 + $0x60] ss:$12 sps:$4 sm:$0xff]   ;;  %v2873_v6 = vld [vmem:[#allocation2 + $0x1e4] ss:$12 sps:$4 sm:$0xff]  }
  0x54   : > { %2510 = vmatprep.subr.bf16.mxu1 %v2771_v39  ;;  %v2831_v39 = vld [vmem:[#allocation2 + $0x428] ss:$12 sps:$4 sm:$0xff]   ;;  %v2877_v12 = vld [vmem:[#allocation2 + $0x1f8] ss:$12 sps:$4 sm:$0xff]   ;;  %v2883_v16 = vld [vmem:[#allocation2 + $0x210] ss:$12 sps:$4 sm:$0xff]  }
  0x55   : > { %v2879_v10 = vld [vmem:[#allocation2 + $0x1fc] ss:$12 sps:$4 sm:$0xff]   ;;  %v2888_v17 = vld [vmem:[#allocation2 + $0x16c] ss:$12 sps:$4 sm:$0xff]   ;;  %s2207_s6 = sshll.u32 %s178_s4, 4  ;;  %s2193_s10 = scalar_lea.sflag [#allocation4], %s176_s27  ;;  %s3329_s6 = int_to_ptr.vmem [resolvable:$true] %s2207_s6 }
  0x56   : > { %877 = vmatmul.mubr.bf16.vlgmr.msra.gmra.mrb[0].mxu1 %v3238_v42  ;;  %820 = vmatpush1.bf16.msra.mxu0 %v2772_v41  ;;  %v2832_v41 = vld [vmem:[#allocation2 + $0x78] ss:$12 sps:$4 sm:$0xff]   ;;  %s3043_s11 = scalar_lea.vmem %s3329_s6, 384  ;;  %p3385_p9 = scmp.ne.s32.totalorder %s3378_s22, 0 }
  0x57   : > { %2511 = vmatpush3.bf16.msra.mxu1 %v2774_v43  ;;  %821 = vmatprep.subr.bf16.mxu0 %v2775_v44  ;;  %v2835_v43 = vld [vmem:[#allocation2 + $0x440] ss:$12 sps:$4 sm:$0xff]   ;;  %p3044_p6 = scmp.ne.s32.totalorder %s3329_s6, %s3043_s11  ;;  %s3117_s16 = smov [#allocation5]  }
  0x58   : > { %2512 = vmatprep.subr.bf16.mxu1 %v2777_v45  ;;  %917 = vmatprep.mubr.bf16.mxu1 %v408_v14  ;;  %v2838_v44 = vld [vmem:[#allocation2 + $0x94] ss:$12 sps:$4 sm:$0xff]   ;;  %v2836_v45 = vld [vmem:[#allocation2 + $0x90] ss:$12 sps:$4 sm:$0xff]   ;;  %s3047_s17 = sshll.u32 %s3117_s16, 4  ;;  %s3048_s17 = int_to_ptr.vmem [resolvable:$false] %s3047_s17 }
  0x59   : > { %v2885_v14 = vld [vmem:[#allocation2 + $0x214] ss:$12 sps:$4 sm:$0xff]   ;;  %p3045_p10 = pnand %p3044_p6, %p3385_p9  ;;  %s3049_s19 = scalar_lea.vmem %s3048_s17, 768 }
  0x5a   : > { %822 = vmatpush1.bf16.msra.mxu0 %v2778_v46  ;;  %v2839_v46 = vld [vmem:[#allocation2 + $0x458] ss:$12 sps:$4 sm:$0xff]   ;;  %p3050_p2 = scmp.lt.s32.totalorder %s3329_s6, %s3048_s17  ;;  %p3051_p3 = scmp.lt.s32.totalorder %s3049_s19, %s3043_s11 }
  0x5b   : > { %2513 = vmatpush3.bf16.msra.mxu1 %v2779_v47  ;;  %823 = vmatprep.subr.bf16.mxu0 %v2780_v48  ;;  %v2842_v47 = vld [vmem:[#allocation2 + $0xac] ss:$12 sps:$4 sm:$0xff]   ;;  %v2840_v48 = vld [vmem:[#allocation2 + $0xa8] ss:$12 sps:$4 sm:$0xff]   ;;  %p3046_p12 = pneg %p3045_p10 }
  0x5c   : > { %2514 = vmatprep.subr.bf16.mxu1 %v2782_v49  ;;  %v2843_v49 = vld [vmem:[#allocation2 + $0x470] ss:$12 sps:$4 sm:$0xff]   ;;  %p3052_p4 = por %p3051_p3, %p3050_p2 }
  0x5e   : > { %824 = vmatpush1.bf16.msra.mxu0 %v2783_v50  ;;  %v2846_v50 = vld [vmem:[#allocation2 + $0xc4] ss:$12 sps:$4 sm:$0xff]   ;;  %p3053_p7 = pnand %p3052_p4, %p3046_p12 }
  0x5f   : > { %2515 = vmatpush3.bf16.msra.mxu1 %v2784_v51  ;;  %825 = vmatprep.subr.bf16.mxu0 %v2785_v52  ;;  %v2849_v51 = vld [vmem:[#allocation2 + $0x184] ss:$12 sps:$4 sm:$0xff]   ;;  %v2844_v52 = vld [vmem:[#allocation2 + $0xc0] ss:$12 sps:$4 sm:$0xff]  }
  0x60   : > { %2516 = vmatprep.subr.bf16.mxu1 %v2787_v53  ;;  %v2847_v53 = vld [vmem:[#allocation2 + $0x180] ss:$12 sps:$4 sm:$0xff]  }
  0x62   : > { %826 = vmatpush1.bf16.msra.mxu0 %v2788_v54  ;;  %v2852_v54 = vld [vmem:[#allocation2 + $0xdc] ss:$12 sps:$4 sm:$0xff]  }
  0x63   : > { %2517 = vmatpush3.bf16.msra.mxu1 %v2789_v55  ;;  %827 = vmatprep.subr.bf16.mxu0 %v2790_v56  ;;  %v2855_v55 = vld [vmem:[#allocation2 + $0x19c] ss:$12 sps:$4 sm:$0xff]   ;;  %v2850_v56 = vld [vmem:[#allocation2 + $0xd8] ss:$12 sps:$4 sm:$0xff]  }
  0x64   : > { %2518 = vmatprep.subr.bf16.mxu1 %v2792_v57  ;;  %v2853_v57 = vld [vmem:[#allocation2 + $0x198] ss:$12 sps:$4 sm:$0xff]  }
  0x66   : > { %828 = vmatpush1.bf16.msra.mxu0 %v2793_v58  ;;  %v2858_v58 = vld [vmem:[#allocation2 + $0xf4] ss:$12 sps:$4 sm:$0xff]  }
  0x67   : > { %2519 = vmatpush3.bf16.msra.mxu1 %v2794_v59  ;;  %829 = vmatprep.subr.bf16.mxu0 %v2795_v60  ;;  %v2861_v59 = vld [vmem:[#allocation2 + $0x1b4] ss:$12 sps:$4 sm:$0xff]   ;;  %v2856_v60 = vld [vmem:[#allocation2 + $0xf0] ss:$12 sps:$4 sm:$0xff]  }
  0x68   : > { %2520 = vmatprep.subr.bf16.mxu1 %v2797_v61  ;;  %v2859_v61 = vld [vmem:[#allocation2 + $0x1b0] ss:$12 sps:$4 sm:$0xff]  }
  0x6a   : > { %830 = vmatpush1.bf16.msra.mxu0 %v2798_v2  ;;  %v2867_v2 = vld [vmem:[#allocation2 + $0x1cc] ss:$12 sps:$4 sm:$0xff]  }
  0x6b   : > { %2521 = vmatpush3.bf16.msra.mxu1 %v2799_v4  ;;  %831 = vmatprep.subr.bf16.mxu0 %v2800_v7  ;;  %v2862_v4 = vld [vmem:[#allocation2 + $0x108] ss:$12 sps:$4 sm:$0xff]   ;;  %v2868_v7 = vld [vmem:[#allocation2 + $0x120] ss:$12 sps:$4 sm:$0xff]  }
  0x6c   : > { %2522 = vmatprep.subr.bf16.mxu1 %v2802_v8  ;;  %v2871_v8 = vld [vmem:[#allocation2 + $0x1e0] ss:$12 sps:$4 sm:$0xff]  }
  0x6e   : > { %832 = vmatpush1.bf16.msra.mxu0 %v2803_v9  ;;  %v2876_v9 = vld [vmem:[#allocation2 + $0x13c] ss:$12 sps:$4 sm:$0xff]  }
  0x6f   : > { %2523 = vmatpush3.bf16.msra.mxu1 %v2804_v11  ;;  %833 = vmatprep.subr.bf16.mxu0 %v2805_v13  ;;  %v2874_v11 = vld [vmem:[#allocation2 + $0x138] ss:$12 sps:$4 sm:$0xff]   ;;  %v2882_v13 = vld [vmem:[#allocation2 + $0x154] ss:$12 sps:$4 sm:$0xff]  }
  0x70   : > { %2524 = vmatprep.subr.bf16.mxu1 %v2807_v15  ;;  %v2880_v15 = vld [vmem:[#allocation2 + $0x150] ss:$12 sps:$4 sm:$0xff]  }
  0x72   : > { %834 = vmatpush1.bf16.msra.mxu0 %v2808_v18  ;;  %v2891_v18 = vld [vmem:[#allocation2 + $0x22c] ss:$12 sps:$4 sm:$0xff]  }
  0x73   : > { %2525 = vmatpush3.bf16.msra.mxu1 %v2809_v19  ;;  %2603 = vmatprep.subr.bf16.mxu0 %v3115_v24  ;;  %v2886_v19 = vld [vmem:[#allocation2 + $0x168] ss:$12 sps:$4 sm:$0xff]  }
  0x74   : > { %1355 = vmatprep.subr.bf16.mxu1 %v2814_v20  ;;  %v2889_v20 = vld [vmem:[#allocation2 + $0x228] ss:$12 sps:$4 sm:$0xff]  }
  0x75   : > { %836 = vmatmul.mubr.bf16.vlgmr.msra.gmra.mrb[0].mxu0 %v401_v21 }
  0x76   : > { %918 = vmatmul.mubr.bf16.vlgmr.msra.gmra.mrb[4].mxu1 %v401_v21  ;;  %2604 = vmatpush3.bf16.msra.mxu0 %v2815_v23  ;;  %v2895_v21 = vld [vmem:[#allocation2 + $0xc8] ss:$12 sps:$4 sm:$0xff]   ;;  %v3278_v23 = vcombine.low %v3230_v30, %v3230_v30  ;;  %v2901_v30 = vld [vmem:[#allocation2 + $0x38] ss:$12 sps:$4 sm:$0xff]  }
  0x77   : > { %1356 = vmatpush1.bf16.msra.mxu1 %v2812_v22  ;;  %2605 = vmatprep.subr.bf16.mxu0 %v3115_v24  ;;  %v3274_v22 = vcombine.low %v3242_v62, %v3242_v62  ;;  %v2902_v62 = vld [vmem:[#allocation2 + $0x1a0] ss:$12 sps:$4 sm:$0xff]  }
  0x78   : > { %1357 = vmatprep.subr.bf16.mxu1 %v2818_v25  ;;  %2619 = vmatprep.mubr.msk.bf16.mxu0 %vm3116_vm0, %v3115_v24  ;;  %v2896_v25 = vld [vmem:[#allocation2 + $0x8] ss:$12 sps:$4 sm:$0xff]  }
  0x79   : > { %1387 = vmatprep.mubr.bf16.mxu1 %v3258_v26 }
  0x7a   : > { %2606 = vmatpush3.bf16.msra.mxu0 %v2819_v28  ;;  %v2897_v28 = vld [vmem:[#allocation2 + $0xe0] ss:$12 sps:$4 sm:$0xff]  }
  0x7b   : > { %1358 = vmatpush1.bf16.msra.mxu1 %v2816_v27  ;;  %2607 = vmatprep.subr.bf16.mxu0 %v3115_v24  ;;  %v2899_v27 = vld [vmem:[#allocation2 + $0x188] ss:$12 sps:$4 sm:$0xff]  }
  0x7c   : > { %1359 = vmatprep.subr.bf16.mxu1 %v2822_v29  ;;  %v2898_v29 = vld [vmem:[#allocation2 + $0x20] ss:$12 sps:$4 sm:$0xff]  }
  0x7e   : > { %2608 = vmatpush3.bf16.msra.mxu0 %v2823_v32  ;;  %v2905_v32 = vld [vmem:[#allocation2 + $0x1b8] ss:$12 sps:$4 sm:$0xff]  }
  0x7f   : > { %1360 = vmatpush1.bf16.msra.mxu1 %v2820_v31  ;;  %2609 = vmatprep.subr.bf16.mxu0 %v3115_v24  ;;  %v2900_v31 = vld [vmem:[#allocation2 + $0xf8] ss:$12 sps:$4 sm:$0xff]  }
  0x80   : > { %1361 = vmatprep.subr.bf16.mxu1 %v2826_v34  ;;  %v2903_v34 = vld [vmem:[#allocation2 + $0x110] ss:$12 sps:$4 sm:$0xff]  }
  0x82   : > { %2610 = vmatpush3.bf16.msra.mxu0 %v2827_v36  ;;  %v2908_v36 = vld [vmem:[#allocation2 + $0x1d0] ss:$12 sps:$4 sm:$0xff]  }
  0x83   : > { %1362 = vmatpush1.bf16.msra.mxu1 %v2824_v35  ;;  %2611 = vmatprep.subr.bf16.mxu0 %v3115_v24  ;;  %v2904_v35 = vld [vmem:[#allocation2 + $0x50] ss:$12 sps:$4 sm:$0xff]  }
  0x84   : > { %1363 = vmatprep.subr.bf16.mxu1 %v2830_v37  ;;  %v2906_v37 = vld [vmem:[#allocation2 + $0x128] ss:$12 sps:$4 sm:$0xff]  }
  0x86   : > { %2612 = vmatpush3.bf16.msra.mxu0 %v2831_v39  ;;  %v2909_v39 = vld [vmem:[#allocation2 + $0x140] ss:$12 sps:$4 sm:$0xff]  }
  0x87   : > { %1364 = vmatpush1.bf16.msra.mxu1 %v2828_v38  ;;  %2613 = vmatprep.subr.bf16.mxu0 %v3115_v24  ;;  %v2911_v38 = vld [vmem:[#allocation2 + $0x1e8] ss:$12 sps:$4 sm:$0xff]  }
  0x88   : > { %1365 = vmatprep.subr.bf16.mxu1 %v2834_v40  ;;  %v2910_v40 = vld [vmem:[#allocation2 + $0x80] ss:$12 sps:$4 sm:$0xff]  }
  0x8a   : > { %2614 = vmatpush3.bf16.msra.mxu0 %v2835_v43  ;;  %v2912_v43 = vld [vmem:[#allocation2 + $0x158] ss:$12 sps:$4 sm:$0xff]  }
  0x8b   : > { %1366 = vmatpush1.bf16.msra.mxu1 %v2832_v41  ;;  %2615 = vmatprep.subr.bf16.mxu0 %v3115_v24  ;;  %v2914_v41 = vld [vmem:[#allocation2 + $0x200] ss:$12 sps:$4 sm:$0xff]  }
  0x8c   : > { %1367 = vmatprep.subr.bf16.mxu1 %v2838_v44  ;;  %v2913_v44 = vld [vmem:[#allocation2 + $0x98] ss:$12 sps:$4 sm:$0xff]  }
  0x8e   : > { %2616 = vmatpush3.bf16.msra.mxu0 %v2839_v46  ;;  %v2915_v46 = vld [vmem:[#allocation2 + $0x170] ss:$12 sps:$4 sm:$0xff]  }
  0x8f   : > { %1368 = vmatpush1.bf16.msra.mxu1 %v2836_v45  ;;  %2617 = vmatprep.subr.bf16.mxu0 %v3115_v24  ;;  %v2917_v45 = vld [vmem:[#allocation2 + $0x218] ss:$12 sps:$4 sm:$0xff]  }
  0x90   : > { %1369 = vmatprep.subr.bf16.mxu1 %v2842_v47  ;;  %v2916_v47 = vld [vmem:[#allocation2 + $0xb0] ss:$12 sps:$4 sm:$0xff]  }
  0x92   : > { %2618 = vmatpush3.bf16.msra.mxu0 %v2843_v49  ;;  %v2920_v49 = vld [vmem:[#allocation2 + $0x484] ss:$12 sps:$4 sm:$0xff]  }
  0x93   : > { %1370 = vmatpush1.bf16.msra.mxu1 %v2840_v48  ;;  %1396 = vmatprep.subr.bf16.mxu0 %v2849_v51  ;;  %v1615_v48 = vrot.slane %v3246_v1, 1  ;;  %v2942_v51 = vld [vmem:[#allocation2 + $0x604] ss:$12 sps:$4 sm:$0xff]   ;;  %v3003_v1 = vld [vmem:[#allocation2 + $0x4e8] ss:$12 sps:$4 sm:$0xff]  }
  0x94   : > { %1371 = vmatprep.subr.bf16.mxu1 %v2846_v50  ;;  %v2921_v50 = vld [vmem:[#allocation2 + $0x230] ss:$12 sps:$4 sm:$0xff]  }
  0x95   : > { %2620 = vmatmul.mubr.bf16.vlgmr.msra.gmra.mrb[4].mxu0 %v3238_v42  ;;  %v2870_v42 = vld [vmem:[#allocation2 + $0x124] ss:$12 sps:$4 sm:$0xff]  }
  0x96   : > { %1397 = vmatpush1.bf16.msra.mxu0 %v2847_v53  ;;  %1428 = vmatprep.mubr.bf16.mxu0 %v3114_v0  ;;  %v2924_v53 = vld [vmem:[#allocation2 + $0x49c] ss:$12 sps:$4 sm:$0xff]  }
  0x97   : > { %1372 = vmatpush1.bf16.msra.mxu1 %v2844_v52  ;;  %1398 = vmatprep.subr.bf16.mxu0 %v2855_v55  ;;  %v2918_v52 = vld [vmem:[#allocation2 + $0x480] ss:$12 sps:$4 sm:$0xff]   ;;  %v2948_v55 = vld [vmem:[#allocation2 + $0x61c] ss:$12 sps:$4 sm:$0xff]  }
  0x98   : > { %1373 = vmatprep.subr.bf16.mxu1 %v2852_v54  ;;  %v2940_v54 = vld [vmem:[#allocation2 + $0x600] ss:$12 sps:$4 sm:$0xff]  }
  0x9a   : > { %1399 = vmatpush1.bf16.msra.mxu0 %v2853_v57  ;;  %v2927_v57 = vld [vmem:[#allocation2 + $0x4b4] ss:$12 sps:$4 sm:$0xff]  }
  0x9b   : > { %1374 = vmatpush1.bf16.msra.mxu1 %v2850_v56  ;;  %1400 = vmatprep.subr.bf16.mxu0 %v2861_v59  ;;  %v2922_v56 = vld [vmem:[#allocation2 + $0x498] ss:$12 sps:$4 sm:$0xff]   ;;  %v2954_v59 = vld [vmem:[#allocation2 + $0x634] ss:$12 sps:$4 sm:$0xff]  }
  0x9c   : > { %1375 = vmatprep.subr.bf16.mxu1 %v2858_v58  ;;  %v2946_v58 = vld [vmem:[#allocation2 + $0x618] ss:$12 sps:$4 sm:$0xff]  }
  0x9e   : > { %1401 = vmatpush1.bf16.msra.mxu0 %v2859_v61  ;;  %v2930_v61 = vld [vmem:[#allocation2 + $0x4cc] ss:$12 sps:$4 sm:$0xff]  }
  0x9f   : > { %1376 = vmatpush1.bf16.msra.mxu1 %v2856_v60  ;;  %1402 = vmatprep.subr.bf16.mxu0 %v2867_v2  ;;  %v2925_v60 = vld [vmem:[#allocation2 + $0x4b0] ss:$12 sps:$4 sm:$0xff]   ;;  %v2960_v2 = vld [vmem:[#allocation2 + $0x64c] ss:$12 sps:$4 sm:$0xff]  }
  0xa0   : > { %1377 = vmatprep.subr.bf16.mxu1 %v2864_v63  ;;  %v2952_v63 = vld [vmem:[#allocation2 + $0x630] ss:$12 sps:$4 sm:$0xff]  }
  0xa2   : > { %1403 = vmatpush1.bf16.msra.mxu0 %v2865_v5  ;;  %v2958_v5 = vld [vmem:[#allocation2 + $0x648] ss:$12 sps:$4 sm:$0xff]  }
  0xa3   : > { %1378 = vmatpush1.bf16.msra.mxu1 %v2862_v4  ;;  %1404 = vmatprep.subr.bf16.mxu0 %v2873_v6  ;;  %v2928_v4 = vld [vmem:[#allocation2 + $0x4c8] ss:$12 sps:$4 sm:$0xff]   ;;  %v2966_v6 = vld [vmem:[#allocation2 + $0x664] ss:$12 sps:$4 sm:$0xff]  }
  0xa4   : > { %1379 = vmatprep.subr.bf16.mxu1 %v2870_v42  ;;  %v2933_v42 = vld [vmem:[#allocation2 + $0x4e4] ss:$12 sps:$4 sm:$0xff]  }
  0xa6   : > { %1405 = vmatpush1.bf16.msra.mxu0 %v2871_v8  ;;  %v2936_v8 = vld [vmem:[#allocation2 + $0x4fc] ss:$12 sps:$4 sm:$0xff]  }
  0xa7   : > { %1380 = vmatpush1.bf16.msra.mxu1 %v2868_v7  ;;  %1406 = vmatprep.subr.bf16.mxu0 %v2879_v10  ;;  %v2964_v7 = vld [vmem:[#allocation2 + $0x660] ss:$12 sps:$4 sm:$0xff]   ;;  %v2934_v10 = vld [vmem:[#allocation2 + $0x4f8] ss:$12 sps:$4 sm:$0xff]  }
  0xa8   : > { %1381 = vmatprep.subr.bf16.mxu1 %v2876_v9  ;;  %v2972_v9 = vld [vmem:[#allocation2 + $0x67c] ss:$12 sps:$4 sm:$0xff]  }
  0xaa   : > { %1407 = vmatpush1.bf16.msra.mxu0 %v2877_v12  ;;  %v2939_v12 = vld [vmem:[#allocation2 + $0x514] ss:$12 sps:$4 sm:$0xff]  }
  0xab   : > { %1382 = vmatpush1.bf16.msra.mxu1 %v2874_v11  ;;  %1408 = vmatprep.subr.bf16.mxu0 %v2885_v14  ;;  %v2970_v11 = vld [vmem:[#allocation2 + $0x678] ss:$12 sps:$4 sm:$0xff]   ;;  %v2937_v14 = vld [vmem:[#allocation2 + $0x510] ss:$12 sps:$4 sm:$0xff]  }
  0xac   : > { %1383 = vmatprep.subr.bf16.mxu1 %v2882_v13  ;;  %v2978_v13 = vld [vmem:[#allocation2 + $0x694] ss:$12 sps:$4 sm:$0xff]  }
  0xae   : > { %1409 = vmatpush1.bf16.msra.mxu0 %v2883_v16  ;;  %v2945_v16 = vld [vmem:[#allocation2 + $0x52c] ss:$12 sps:$4 sm:$0xff]  }
  0xaf   : > { %1384 = vmatpush1.bf16.msra.mxu1 %v2880_v15  ;;  %1410 = vmatprep.subr.bf16.mxu0 %v2891_v18  ;;  %v2976_v15 = vld [vmem:[#allocation2 + $0x690] ss:$12 sps:$4 sm:$0xff]   ;;  %v2943_v18 = vld [vmem:[#allocation2 + $0x528] ss:$12 sps:$4 sm:$0xff]  }
  0xb0   : > { %1385 = vmatprep.subr.bf16.mxu1 %v2888_v17  ;;  %v2984_v17 = vld [vmem:[#allocation2 + $0x6ac] ss:$12 sps:$4 sm:$0xff]  }
  0xb2   : > { %1411 = vmatpush1.bf16.msra.mxu0 %v2889_v20  ;;  %v2951_v20 = vld [vmem:[#allocation2 + $0x544] ss:$12 sps:$4 sm:$0xff]  }
  0xb3   : > { %1386 = vmatpush1.bf16.msra.mxu1 %v2886_v19  ;;  %2541 = vmatprep.subr.bf16.mxu0 %v2895_v21  ;;  %v2982_v19 = vld [vmem:[#allocation2 + $0x6a8] ss:$12 sps:$4 sm:$0xff]  }
  0xb4   : > { %2623 = vmatprep.subr.bf16.mxu1 %v3115_v24  ;;  %v2988_v21 = vld [vmem:[#allocation2 + $0x548] ss:$12 sps:$4 sm:$0xff]  }
  0xb5   : > { %1429 = vmatmul.mubr.bf16.vlgmr.msra.gmra.mrb[8].mxu0 %v3278_v23 }
  0xb6   : > { %1388 = vmatmul.mubr.bf16.vlgmr.msra.gmra.mrb[8].mxu1 %v3274_v22  ;;  %2542 = vmatpush3.bf16.msra.mxu0 %v2896_v25  ;;  %v2989_v25 = vld [vmem:[#allocation2 + $0x488] ss:$12 sps:$4 sm:$0xff]  }
  0xb7   : > { %2624 = vmatpush3.bf16.msra.mxu1 %v2899_v27  ;;  %2543 = vmatprep.subr.bf16.mxu0 %v2897_v28  ;;  %v2957_v27 = vld [vmem:[#allocation2 + $0x55c] ss:$12 sps:$4 sm:$0xff]   ;;  %v2993_v28 = vld [vmem:[#allocation2 + $0x560] ss:$12 sps:$4 sm:$0xff]  }
  0xb8   : > { %2625 = vmatprep.subr.bf16.mxu1 %v3115_v24  ;;  %1469 = vmatprep.mubr.bf16.mxu0 %v3258_v26  ;;  %v2907_v26 = vld [vmem:[#allocation2 + $0x68] ss:$12 sps:$4 sm:$0xff]  }
  0xb9   : > { %2639 = vmatprep.mubr.msk.bf16.mxu1 %vm3116_vm0, %v3115_v24 }
  0xba   : > { %2544 = vmatpush3.bf16.msra.mxu0 %v2898_v29  ;;  %v2955_v29 = vld [vmem:[#allocation2 + $0x558] ss:$12 sps:$4 sm:$0xff]  }
  0xbb   : > { %2626 = vmatpush3.bf16.msra.mxu1 %v2902_v62  ;;  %2545 = vmatprep.subr.bf16.mxu0 %v2900_v31  ;;  %v2994_v62 = vld [vmem:[#allocation2 + $0x4a0] ss:$12 sps:$4 sm:$0xff]  }
  0xbc   : > { %2627 = vmatprep.subr.bf16.mxu1 %v3115_v24  ;;  %v2963_v31 = vld [vmem:[#allocation2 + $0x574] ss:$12 sps:$4 sm:$0xff]  }
  0xbe   : > { %2546 = vmatpush3.bf16.msra.mxu0 %v2901_v30  ;;  %v2996_v30 = vld [vmem:[#allocation2 + $0x578] ss:$12 sps:$4 sm:$0xff]  }
  0xbf   : > { %2628 = vmatpush3.bf16.msra.mxu1 %v2905_v32  ;;  %2547 = vmatprep.subr.bf16.mxu0 %v2903_v34  ;;  %v2961_v32 = vld [vmem:[#allocation2 + $0x570] ss:$12 sps:$4 sm:$0xff]   ;;  %v2997_v34 = vld [vmem:[#allocation2 + $0x4b8] ss:$12 sps:$4 sm:$0xff]  }
  0xc0   : > { %2629 = vmatprep.subr.bf16.mxu1 %v3115_v24 }
  0xc2   : > { %2548 = vmatpush3.bf16.msra.mxu0 %v2904_v35  ;;  %v2969_v35 = vld [vmem:[#allocation2 + $0x58c] ss:$12 sps:$4 sm:$0xff]  }
  0xc3   : > { %2630 = vmatpush3.bf16.msra.mxu1 %v2908_v36  ;;  %2549 = vmatprep.subr.bf16.mxu0 %v2906_v37  ;;  %v2999_v36 = vld [vmem:[#allocation2 + $0x590] ss:$12 sps:$4 sm:$0xff]   ;;  %v2967_v37 = vld [vmem:[#allocation2 + $0x588] ss:$12 sps:$4 sm:$0xff]  }
  0xc4   : > { %2631 = vmatprep.subr.bf16.mxu1 %v3115_v24 }
  0xc6   : > { %2550 = vmatpush3.bf16.msra.mxu0 %v2907_v26  ;;  %v3000_v26 = vld [vmem:[#allocation2 + $0x4d0] ss:$12 sps:$4 sm:$0xff]  }
  0xc7   : > { %2632 = vmatpush3.bf16.msra.mxu1 %v2911_v38  ;;  %2551 = vmatprep.subr.bf16.mxu0 %v2909_v39  ;;  %v2975_v38 = vld [vmem:[#allocation2 + $0x5a4] ss:$12 sps:$4 sm:$0xff]   ;;  %v3002_v39 = vld [vmem:[#allocation2 + $0x5a8] ss:$12 sps:$4 sm:$0xff]  }
  0xc8   : > { %2633 = vmatprep.subr.bf16.mxu1 %v3115_v24 }
  0xca   : > { %2552 = vmatpush3.bf16.msra.mxu0 %v2910_v40  ;;  %v2973_v40 = vld [vmem:[#allocation2 + $0x5a0] ss:$12 sps:$4 sm:$0xff]  }
  0xcb   : > { %2634 = vmatpush3.bf16.msra.mxu1 %v2914_v41  ;;  %2553 = vmatprep.subr.bf16.mxu0 %v2912_v43  ;;  %v2981_v41 = vld [vmem:[#allocation2 + $0x5bc] ss:$12 sps:$4 sm:$0xff]   ;;  %v3005_v43 = vld [vmem:[#allocation2 + $0x5c0] ss:$12 sps:$4 sm:$0xff]  }
  0xcc   : > { %2635 = vmatprep.subr.bf16.mxu1 %v3115_v24 }
  0xce   : > { %2554 = vmatpush3.bf16.msra.mxu0 %v2913_v44  ;;  %v2979_v44 = vld [vmem:[#allocation2 + $0x5b8] ss:$12 sps:$4 sm:$0xff]  }
  0xcf   : > { %2636 = vmatpush3.bf16.msra.mxu1 %v2917_v45  ;;  %2555 = vmatprep.subr.bf16.mxu0 %v2915_v46  ;;  %v3006_v45 = vld [vmem:[#allocation2 + $0x500] ss:$12 sps:$4 sm:$0xff]  }
  0xd0   : > { %2637 = vmatprep.subr.bf16.mxu1 %v3115_v24  ;;  %v2987_v46 = vld [vmem:[#allocation2 + $0x5d4] ss:$12 sps:$4 sm:$0xff]  }
  0xd2   : > { %2556 = vmatpush3.bf16.msra.mxu0 %v2916_v47  ;;  %v3008_v47 = vld [vmem:[#allocation2 + $0x5d8] ss:$12 sps:$4 sm:$0xff]  }
  0xd3   : > { %2638 = vmatpush3.bf16.msra.mxu1 %v2921_v50  ;;  %2004 = vmatprep.subr.bf16.mxu0 %v2920_v49  ;;  %v3009_v49 = vld [vmem:[#allocation2 + $0x518] ss:$12 sps:$4 sm:$0xff]  }
  0xd4   : > { %2045 = vmatprep.subr.bf16.mxu1 %v2942_v51  ;;  %v2992_v50 = vld [vmem:[#allocation2 + $0x5ec] ss:$12 sps:$4 sm:$0xff]   ;;  %v3011_v51 = vld [vmem:[#allocation2 + $0x5f0] ss:$12 sps:$4 sm:$0xff]  }
  0xd5   : > { %1470 = vmatmul.mubr.bf16.vlgmr.msra.gmra.mrb[12].mxu0 %v3274_v22  ;;  %v1616_v22 = vrot.slane %v3234_v33, 1 }
  0xd6   : > { %2640 = vmatmul.mubr.bf16.vlgmr.msra.gmra.mrb[12].mxu1 %v3278_v23  ;;  %2005 = vmatpush1.bf16.msra.mxu0 %v2918_v52  ;;  %v2949_v23 = vld [vmem:[#allocation2 + $0x540] ss:$12 sps:$4 sm:$0xff]   ;;  %v2990_v52 = vld [vmem:[#allocation2 + $0x5e8] ss:$12 sps:$4 sm:$0xff]  }
  0xd7   : > { %2046 = vmatpush1.bf16.msra.mxu1 %v2940_v54  ;;  %2006 = vmatprep.subr.bf16.mxu0 %v2924_v53  ;;  %v3012_v53 = vld [vmem:[#allocation2 + $0x530] ss:$12 sps:$4 sm:$0xff]   ;;  %v1614_v54 = vrot.slane %v3249_v3, 1 }
  0xd8   : > { %2047 = vmatprep.subr.bf16.mxu1 %v2948_v55  ;;  %2077 = vmatprep.mubr.bf16.mxu1 %v3114_v0  ;;  %v2931_v0 = vld [vmem:[#allocation2 + $0x4e0] ss:$12 sps:$4 sm:$0xff]   ;;  %v2995_v55 = vld [vmem:[#allocation2 + $0x608] ss:$12 sps:$4 sm:$0xff]   ;;  %v3004_v3 = vld [vmem:[#allocation2 + $0x650] ss:$12 sps:$4 sm:$0xff]  }
  0xd9   : > { %2036 = vmatprep.mubr.bf16.mxu0 %v1615_v48 }
  0xda   : > { %2007 = vmatpush1.bf16.msra.mxu0 %v2922_v56  ;;  %v2998_v56 = vld [vmem:[#allocation2 + $0x620] ss:$12 sps:$4 sm:$0xff]  }
  0xdb   : > { %2048 = vmatpush1.bf16.msra.mxu1 %v2946_v58  ;;  %2008 = vmatprep.subr.bf16.mxu0 %v2927_v57  ;;  %v3001_v57 = vld [vmem:[#allocation2 + $0x638] ss:$12 sps:$4 sm:$0xff]   ;;  %v3007_v58 = vld [vmem:[#allocation2 + $0x668] ss:$12 sps:$4 sm:$0xff]  }
  0xdc   : > { %2049 = vmatprep.subr.bf16.mxu1 %v2954_v59  ;;  %v3010_v59 = vld [vmem:[#allocation2 + $0x680] ss:$12 sps:$4 sm:$0xff]  }
  0xde   : > { %2009 = vmatpush1.bf16.msra.mxu0 %v2925_v60 }
  0xdf   : > { %2050 = vmatpush1.bf16.msra.mxu1 %v2952_v63  ;;  %2010 = vmatprep.subr.bf16.mxu0 %v2930_v61  ;;  %v3013_v63 = vld [vmem:[#allocation2 + $0x698] ss:$12 sps:$4 sm:$0xff]  }
  0xe0   : > { %2051 = vmatprep.subr.bf16.mxu1 %v2960_v2 }
  0xe2   : > { %2011 = vmatpush1.bf16.msra.mxu0 %v2928_v4 }
  0xe3   : > { %2052 = vmatpush1.bf16.msra.mxu1 %v2958_v5  ;;  %2012 = vmatprep.subr.bf16.mxu0 %v2933_v42  ;;  %v3014_v5 = vld [vmem:[#allocation2 + $0x6b0] ss:$12 sps:$4 sm:$0xff]  }
  0xe4   : > { %2053 = vmatprep.subr.bf16.mxu1 %v2966_v6 }
  0xe6   : > { %2013 = vmatpush1.bf16.msra.mxu0 %v2931_v0 }
  0xe7   : > { %2054 = vmatpush1.bf16.msra.mxu1 %v2964_v7  ;;  %2014 = vmatprep.subr.bf16.mxu0 %v2936_v8 }
  0xe8   : > { %2055 = vmatprep.subr.bf16.mxu1 %v2972_v9 }
  0xea   : > { %2015 = vmatpush1.bf16.msra.mxu0 %v2934_v10 }
  0xeb   : > { %2056 = vmatpush1.bf16.msra.mxu1 %v2970_v11  ;;  %2016 = vmatprep.subr.bf16.mxu0 %v2939_v12 }
  0xec   : > { %2057 = vmatprep.subr.bf16.mxu1 %v2978_v13 }
  0xee   : > { %2017 = vmatpush1.bf16.msra.mxu0 %v2937_v14 }
  0xef   : > { %2058 = vmatpush1.bf16.msra.mxu1 %v2976_v15  ;;  %2018 = vmatprep.subr.bf16.mxu0 %v2945_v16 }
  0xf0   : > { %2059 = vmatprep.subr.bf16.mxu1 %v2984_v17 }
  0xf2   : > { %2019 = vmatpush1.bf16.msra.mxu0 %v2943_v18 }
  0xf3   : > { %2060 = vmatpush1.bf16.msra.mxu1 %v2982_v19  ;;  %2020 = vmatprep.subr.bf16.mxu0 %v2951_v20 }
  0xf4   : > { %2572 = vmatprep.subr.bf16.mxu1 %v2988_v21 }
  0xf6   : > { %2078 = vmatmul.mubr.bf16.vlgmr.msra.gmra.mrb[16].mxu1 %v1616_v22  ;;  %2021 = vmatpush1.bf16.msra.mxu0 %v2949_v23 }
  0xf7   : > { %2573 = vmatpush3.bf16.msra.mxu1 %v2989_v25  ;;  %2022 = vmatprep.subr.bf16.mxu0 %v2957_v27 }
  0xf8   : > { %2574 = vmatprep.subr.bf16.mxu1 %v2993_v28  ;;  %2118 = vmatprep.mubr.bf16.mxu1 %v1615_v48  ;;  %v2985_v48 = vld [vmem:[#allocation2 + $0x5d0] ss:$12 sps:$4 sm:$0xff]  }
  0xfa   : > { %2023 = vmatpush1.bf16.msra.mxu0 %v2955_v29 }
  0xfb   : > { %2575 = vmatpush3.bf16.msra.mxu1 %v2994_v62  ;;  %2024 = vmatprep.subr.bf16.mxu0 %v2963_v31 }
  0xfc   : > { %2576 = vmatprep.subr.bf16.mxu1 %v2996_v30 }
  0xfe   : > { %2025 = vmatpush1.bf16.msra.mxu0 %v2961_v32 }
  0xff   : > { %2577 = vmatpush3.bf16.msra.mxu1 %v2997_v34  ;;  %2026 = vmatprep.subr.bf16.mxu0 %v2969_v35 }
 0x100   : > { %2578 = vmatprep.subr.bf16.mxu1 %v2999_v36 }
 0x102   : > { %2027 = vmatpush1.bf16.msra.mxu0 %v2967_v37 }
 0x103   : > { %2579 = vmatpush3.bf16.msra.mxu1 %v3000_v26  ;;  %2028 = vmatprep.subr.bf16.mxu0 %v2975_v38 }
 0x104   : > { %2580 = vmatprep.subr.bf16.mxu1 %v3002_v39 }
 0x106   : > { %2029 = vmatpush1.bf16.msra.mxu0 %v2973_v40 }
 0x107   : > { %2581 = vmatpush3.bf16.msra.mxu1 %v3003_v1  ;;  %2030 = vmatprep.subr.bf16.mxu0 %v2981_v41 }
 0x108   : > { %2582 = vmatprep.subr.bf16.mxu1 %v3005_v43 }
 0x10a   : > { %2031 = vmatpush1.bf16.msra.mxu0 %v2979_v44 }
 0x10b   : > { %2583 = vmatpush3.bf16.msra.mxu1 %v3006_v45  ;;  %2032 = vmatprep.subr.bf16.mxu0 %v2987_v46  ;;  %v2171_v46 = vlaneseq }
 0x10c   : > { %2584 = vmatprep.subr.bf16.mxu1 %v3008_v47 }
 0x10d   : > { %v2172_v47 = vshrl.u32 %v2171_v46, 7 }
 0x10e   : > { %2033 = vmatpush1.bf16.msra.mxu0 %v2985_v48 }
 0x10f   : > { %2585 = vmatpush3.bf16.msra.mxu1 %v3009_v49  ;;  %2034 = vmatprep.subr.bf16.mxu0 %v2992_v50  ;;  %v2173_v48 = vsub.s32 0, %v2172_v47  ;;  %v2169_v49 = vld [vmem:[%s3373_s2] sm:$0x7]  ;;  %v2177_v50 = vsub.s32 1, %v2172_v47 }
 0x110   : > { %2586 = vmatprep.subr.bf16.mxu1 %v3011_v51 }
 0x112   : > { %2035 = vmatpush1.bf16.msra.mxu0 %v2990_v52 }
 0x113   : > { %2587 = vmatpush3.bf16.msra.mxu1 %v3012_v53  ;;  %2643 = vmatprep.subr.bf16.mxu0 %v3115_v24 }
 0x115   : > { %2037 = vmatmul.mubr.bf16.vlgmr.msra.gmra.mrb[16].mxu0 %v1614_v54 }
 0x116   : > { %2119 = vmatmul.mubr.bf16.vlgmr.msra.gmra.mrb[20].mxu1 %v1614_v54  ;;  %2644 = vmatpush3.bf16.msra.mxu0 %v2995_v55  ;;  %v2174_v54 = vrot.slane %v2169_v49, %v2173_v48 }
 0x117   : > { %2659 = vmatprep.mubr.msk.bf16.mxu0 %vm3116_vm0, %v3115_v24  ;;  %2645 = vmatprep.subr.bf16.mxu0 %v3115_v24 }
 0x11a   : > { %2646 = vmatpush3.bf16.msra.mxu0 %v2998_v56 }
 0x11b   : > { %2647 = vmatprep.subr.bf16.mxu0 %v3115_v24 }
 0x11e   : > { %2648 = vmatpush3.bf16.msra.mxu0 %v3001_v57 }
 0x11f   : > { %2649 = vmatprep.subr.bf16.mxu0 %v3115_v24 }
 0x122   : > { %2650 = vmatpush3.bf16.msra.mxu0 %v3004_v3  ;;  %v2178_v3 = vrot.slane %v2169_v49, %v2177_v50 }
 0x123   : > { %2651 = vmatprep.subr.bf16.mxu0 %v3115_v24 }
 0x126   : > { %2652 = vmatpush3.bf16.msra.mxu0 %v3007_v58 }
 0x127   : > { %2653 = vmatprep.subr.bf16.mxu0 %v3115_v24 }
 0x129   : > { %v878_v60 = vpop.f32.mrb[0].mxu1 }
 0x12a   : > { %v880_v61 = vpop.f32.mrb[1].mxu1  ;;  %2654 = vmatpush3.bf16.msra.mxu0 %v3010_v59 }
 0x12b   : > { %v882_v2 = vpop.f32.mrb[2].mxu1  ;;  %2655 = vmatprep.subr.bf16.mxu0 %v3115_v24 }
 0x12c   : > { %v883_v4 = vpop.f32.mrb[3].mxu1 }
 0x12e   : > { %2656 = vmatpush3.bf16.msra.mxu0 %v3013_v63 }
 0x12f   : > { %2657 = vmatprep.subr.bf16.mxu0 %v3115_v24 }
 0x132   : > { %2658 = vmatpush3.bf16.msra.mxu0 %v3014_v5 }
 0x135   : > { %2660 = vmatmul.mubr.bf16.vlgmr.msra.gmra.mrb[20].mxu0 %v1616_v22 }
 0x148   : > { %v837_v42 = vpop.f32.mrb[0].mxu0 }
 0x149   : > { %v2526_v6 = vpop.f32.mrb[4].mxu1  ;;  %v879_v0 = vadd.f32 %v878_v60, %v837_v42  ;;  %v839_v7 = vpop.f32.mrb[1].mxu0 }
 0x14a   : > { %v2527_v8 = vpop.f32.mrb[5].mxu1  ;;  %v881_v9 = vadd.f32 %v880_v61, %v839_v7  ;;  %v841_v10 = vpop.f32.mrb[2].mxu0 }
 0x14b   : > { %v2528_v11 = vadd.f32 %v2527_v8, %v2526_v6  ;;  %v2529_v12 = vpop.f32.mrb[6].mxu1  ;;  %v842_v13 = vpop.f32.mrb[3].mxu0  ;;  %v2181_v6 = vsub.s32 2, %v2172_v47 }
 0x14c   : > { %v2530_v14 = vpop.f32.mrb[7].mxu1 }
 0x14d   : > { %v2182_v8 = vrot.slane %v2169_v49, %v2181_v6 }
 0x168   : > { %v959_v15 = vpop.f32.mrb[4].mxu0 }
 0x169   : > { %v960_v16 = vadd.f32 %v2528_v11, %v959_v15  ;;  %v2621_v17 = vpop.f32.mrb[5].mxu0 }
 0x16a   : > { %v962_v18 = vpop.f32.mrb[6].mxu0 }
 0x16b   : > { %v2622_v24 = vpop.f32.mrb[7].mxu0 }
 0x188   : > { %v1430_v20 = vpop.f32.mrb[8].mxu0 }
 0x189   : > { %v1389_v19 = vpop.f32.mrb[8].mxu1  ;;  %v1432_v22 = vpop.f32.mrb[9].mxu0 }
 0x18a   : > { %v1390_v33 = vadd.f32 %v1389_v19, %v879_v0  ;;  %v1391_v21 = vpop.f32.mrb[9].mxu1  ;;  %v1434_v25 = vpop.f32.mrb[10].mxu0 }
 0x18b   : > { %v1392_v23 = vadd.f32 %v1391_v21, %v881_v9  ;;  %v1393_v27 = vpop.f32.mrb[10].mxu1  ;;  %v1435_v29 = vpop.f32.mrb[11].mxu0 }
 0x18c   : > { %v1431_v28 = vadd.f32 %v1430_v20, %v1390_v33  ;;  %v1394_v62 = vpop.f32.mrb[11].mxu1 }
 0x18d   : > { %v1433_v31 = vadd.f32 %v1432_v22, %v1392_v23 }
 0x1a8   : > { %v2557_v30 = vpop.f32.mrb[12].mxu0 }
 0x1a9   : > { %v1511_v32 = vpop.f32.mrb[12].mxu1  ;;  %v2558_v34 = vpop.f32.mrb[13].mxu0 }
 0x1aa   : > { %v2641_v35 = vpop.f32.mrb[13].mxu1  ;;  %v2559_v36 = vadd.f32 %v2558_v34, %v2557_v30  ;;  %v2560_v37 = vpop.f32.mrb[14].mxu0 }
 0x1ab   : > { %v1514_v26 = vpop.f32.mrb[14].mxu1  ;;  %v2561_v38 = vpop.f32.mrb[15].mxu0 }
 0x1ac   : > { %v2642_v39 = vpop.f32.mrb[15].mxu1  ;;  %v1472_v40 = vadd.f32 %v2559_v36, %v960_v16 }
 0x1ae   : > { %v1512_v1 = vadd.f32 %v1511_v32, %v1472_v40 }
 0x1c9   : > { %v2079_v41 = vpop.f32.mrb[16].mxu1 }
 0x1ca   : > { %v2081_v43 = vpop.f32.mrb[17].mxu1 }
 0x1cb   : > { %v2083_v44 = vpop.f32.mrb[18].mxu1 }
 0x1cc   : > { %v2084_v45 = vpop.f32.mrb[19].mxu1 }
 0x1e8   : > { %v2038_v51 = vpop.f32.mrb[16].mxu0 }
 0x1e9   : > { %v2588_v52 = vpop.f32.mrb[20].mxu1  ;;  %v2080_v53 = vadd.f32 %v2079_v41, %v2038_v51  ;;  %v2040_v55 = vpop.f32.mrb[17].mxu0 }
 0x1ea   : > { %v2589_v56 = vpop.f32.mrb[21].mxu1  ;;  %v2082_v57 = vadd.f32 %v2081_v43, %v2040_v55  ;;  %v2042_v58 = vpop.f32.mrb[18].mxu0 }
 0x1eb   : > { %v2590_v59 = vadd.f32 %v2589_v56, %v2588_v52  ;;  %v2591_v60 = vpop.f32.mrb[22].mxu1  ;;  %v2166_v61 = vadd.f32 %v2080_v53, %v1431_v28  ;;  %v2043_v63 = vpop.f32.mrb[19].mxu0 }
 0x1ec   : > { %v2592_v2 = vpop.f32.mrb[23].mxu1  ;;  %v2167_v4 = vadd.f32 %v2082_v57, %v1433_v31 }
 0x1ed   : > { %v2186_v5 = vadd.f32 %v2174_v54, %v2166_v61 }
 0x1ee   : > { %v2187_v42 = vadd.f32 %v2178_v3, %v2167_v4 }
 0x1ef   : > { %2189 = vst [vmem:[%s178_s4] sm:$0xff] %v2186_v5 }
 0x1f0   : > { %2190 = vst [vmem:[%s178_s4 + $0x8] sm:$0xff] %v2187_v42 }
 0x208   : > { %v2160_v0 = vpop.f32.mrb[20].mxu0 }
 0x209   : > { %v2161_v7 = vadd.f32 %v2590_v59, %v2160_v0  ;;  %v2661_v9 = vpop.f32.mrb[21].mxu0 }
 0x20a   : > { %v2163_v10 = vpop.f32.mrb[22].mxu0 }
 0x20b   : > { %v2168_v11 = vadd.f32 %v2161_v7, %v1512_v1  ;;  %v2662_v12 = vpop.f32.mrb[23].mxu0 }
 0x20d   : > { %v2188_v13 = vadd.f32 %v2182_v8, %v2168_v11 }
 0x20f   : > { %2191 = vst [vmem:[%s178_s4 + $0x10] sm:$0xff] %v2188_v13 }
 0x210   : > { %3056 = shalt.err (!%p3053_p7)
}
 0x211   : > { %s3057_s20 = scalar_lea.hbm %s3327_s9, 384  ;;  %s3061_s26 = scalar_lea.hbm %s3374_s3, 768 }
 0x212   : > { %p3058_p8 = scmp.ne.s32.totalorder %s3327_s9, %s3057_s20  ;;  %p3062_p1 = scmp.lt.u32.totalorder %s3327_s9, %s3374_s3 }
 0x213   : > { %p3063_p0 = scmp.lt.u32.totalorder %s3061_s26, %s3057_s20  ;;  %p3065_p6 = scmp.lt.u32.totalorder %s3057_s20, %s3327_s9 }
 0x214   : > { %p3059_p11 = pnand %p3058_p8, %p3385_p9 }
 0x215   : > { %p3064_p5 = por %p3063_p0, %p3062_p1 }
 0x216   : > { %p3060_p13 = pneg %p3059_p11 }
 0x217   : > { %p3066_p10 = por %p3065_p6, %p3064_p5 }
 0x219   : > { %p3067_p12 = pnand %p3066_p10, %p3060_p13 }
 0x21b   : > { %3070 = shalt.err (!%p3067_p12)
}
 0x21c   : > { %2670 = dma.vmem_to_hbm [thread:$0]  (%p3385_p9), %s3329_s6, 384, %s3327_s9, %s2193_s10  }
 0x21d PF: > { %p2682_p2 = scmp.ge.s32.totalorder %s3109_s15, 2  ;;  %s2219_s29 = sand.u32 1, %s3097_s12  }
 0x21e   : > { %p3386_p3 = scmp.ne.s32.totalorder %s3379_s23, 0  ;;  %s2220_s30 = scalar_lea.sflag [#allocation4], %s2219_s29 }
 0x220   : > { %p2677_p4 = pnand %p2682_p2, %p3386_p3 }
 0x222   : > { %3092 = dma.done.wait (!%p2677_p4), %s2220_s30, 384  }
 0x223   : > { %3094 = vsyncadd (!%p2677_p4), %s2220_s30, 4294966912  ;;  %p14_p7 = scmp.ge.s32.totalorder %s3163_s18, 4   ;;  %s3387_s12 = smov %s3101_s13 }
 0x224   : > { %s3388_s13 = smov %s3105_s14  ;;  %s3389_s14 = smov %s3174_s21 }
 0x225   : > { %s3390_s15 = smov %s3163_s18  ;;  %16 = sbr.rel (!%p14_p7) target bundleno = 4 (0x4), region = 74 }
 0x22c   :  { %2225 = vsyncpa [#allocation3], 1 }
 0x22d   :  { %2227 = vsyncpa [#allocation3 + $0x1], 1 }
 0x22e   :  { %2228 = vsyncpa [#allocation4], 1 }
 0x22f   :  { %2230 = vsyncpa [#allocation4 + $0x1], 1 }

</bundles_post_ra>
